<compile_context>
chip_gen: v7x
topology: tpu7x:2x2x1
jax: 0.10.0
libtpu: 0.0.40
codegen_flags: <defaults>
</compile_context>

<pallas_src>
import numpy as np
import jax
import jax.numpy as jnp
from jax.experimental import pallas as pl
from jax.experimental.pallas import tpu as pltpu

_MAX_OUTSTANDING_DMAS = 4          # concurrent chunk DMAs for big inputs
_CHUNK_THRESHOLD_BYTES = 1 << 20   # below this, one whole-array DMA is plenty


def _make_clone_kernel(num_chunks: int, chunk: int, dim0: int):
    """Build a kernel that issues `num_chunks` HBM->HBM DMAs over the lead axis."""

    def kernel(x_ref, o_ref, sems):
        if num_chunks == 1:
            cp = pltpu.make_async_copy(x_ref, o_ref, sems.at[0])
            cp.start()
            cp.wait()
            return
        copies = []
        for c in range(num_chunks):            # static unroll (num_chunks <= 4)
            start = c * chunk
            size = min(chunk, dim0 - start)    # last chunk may be shorter
            copies.append(
                pltpu.make_async_copy(
                    x_ref.at[pl.ds(start, size)],
                    o_ref.at[pl.ds(start, size)],
                    sems.at[c],
                )
            )
        for cp in copies:                      # keep all DMAs outstanding
            cp.start()
        for cp in copies:
            cp.wait()

    return kernel


def clone(x: jax.Array) -> jax.Array:
    """Pallas equivalent of torch.clone(x): a fresh buffer holding x's values."""
    orig_shape = x.shape
    if x.size == 0:
        # Nothing to copy; still return a distinct (empty) array.
        return jnp.zeros(orig_shape, dtype=x.dtype)

    # 0-d arrays: give the DMA a rank-1 view (metadata-only reshape).
    xk = x.reshape(1) if x.ndim == 0 else x

    itemsize = np.dtype(x.dtype).itemsize
    nbytes = x.size * itemsize
    dim0 = xk.shape[0]

    if nbytes >= _CHUNK_THRESHOLD_BYTES and dim0 >= 2:
        num_chunks = min(_MAX_OUTSTANDING_DMAS, dim0)
    else:
        num_chunks = 1
    chunk = pl.cdiv(dim0, num_chunks)
    num_chunks = pl.cdiv(dim0, chunk)          # actual chunk count after ceil-div

    out = pl.pallas_call(
        _make_clone_kernel(num_chunks, chunk, dim0),
        out_shape=jax.ShapeDtypeStruct(xk.shape, xk.dtype),
        in_specs=[pl.BlockSpec(memory_space=pl.ANY)],
        out_specs=pl.BlockSpec(memory_space=pl.ANY),
        scratch_shapes=[pltpu.SemaphoreType.DMA((num_chunks,))],
        cost_estimate=pl.CostEstimate(
            flops=0, transcendentals=0, bytes_accessed=2 * nbytes),
    )(xk)

    return out.reshape(orig_shape) if x.ndim == 0 else out


if __name__ == "__main__":
    key = jax.random.PRNGKey(0)

    # Matches Clone.get_inputs(): torch.rand(3, 1) -> uniform [0, 1), float32.
    x = jax.random.uniform(key, (3, 1), dtype=jnp.float32)
    y = clone(x)
    jax.block_until_ready(y)
    assert y.shape == x.shape and y.dtype == x.dtype
    assert bool(jnp.all(y == x))

    # Ragged, unaligned shape: still a single whole-array DMA, no padding.
    x2 = jax.random.uniform(jax.random.PRNGKey(1), (37, 133), dtype=jnp.float32)
    y2 = clone(x2)
    jax.block_until_ready(y2)
    assert y2.shape == x2.shape and y2.dtype == x2.dtype
    assert bool(jnp.all(y2 == x2))

    # Larger tensor: exercises the multi-outstanding-DMA chunked path.
    x3 = jax.random.uniform(jax.random.PRNGKey(2), (1024, 512), dtype=jnp.float32)
    y3 = clone(x3)
    jax.block_until_ready(y3)
    assert y3.shape == x3.shape and y3.dtype == x3.dtype
    assert bool(jnp.all(y3 == x3))

    print("KERNEL_OK")
</pallas_src>

<mosaic_0001>
module attributes {stable_mosaic.version = 11 : i64} {
  func.func @kernel(%arg0: memref<3x1xf32, #tpu.memory_space<any>>, %arg1: memref<3x1xf32, #tpu.memory_space<any>>, %arg2: memref<1x!tpu.dma_semaphore, #tpu.memory_space<semaphore_mem>>) attributes {dimension_semantics = [], scalar_prefetch = 0 : i64, scratch_operands = 1 : i64, tpu.core_type = #tpu.core_type<tc>} {
    %c0_i32 = arith.constant 0 : i32
    %0 = tpu.memref_slice %arg2[%c0_i32] : memref<1x!tpu.dma_semaphore, #tpu.memory_space<semaphore_mem>> -> memref<1x!tpu.dma_semaphore, #tpu.memory_space<semaphore_mem>>
    %1 = tpu.memref_squeeze %0 : memref<1x!tpu.dma_semaphore, #tpu.memory_space<semaphore_mem>> -> memref<!tpu.dma_semaphore, #tpu.memory_space<semaphore_mem>>
    tpu.enqueue_dma source(%arg0 : memref<3x1xf32, #tpu.memory_space<any>>) target(%arg1 : memref<3x1xf32, #tpu.memory_space<any>>) target_semaphore(%1 : memref<!tpu.dma_semaphore, #tpu.memory_space<semaphore_mem>>)
    %c0_i32_0 = arith.constant 0 : i32
    %2 = tpu.memref_slice %arg2[%c0_i32_0] : memref<1x!tpu.dma_semaphore, #tpu.memory_space<semaphore_mem>> -> memref<1x!tpu.dma_semaphore, #tpu.memory_space<semaphore_mem>>
    %3 = tpu.memref_squeeze %2 : memref<1x!tpu.dma_semaphore, #tpu.memory_space<semaphore_mem>> -> memref<!tpu.dma_semaphore, #tpu.memory_space<semaphore_mem>>
    tpu.wait_dma2 semaphore(%3 : memref<!tpu.dma_semaphore, #tpu.memory_space<semaphore_mem>>) src(%arg0 : memref<3x1xf32, #tpu.memory_space<any>>) dst(%arg1 : memref<3x1xf32, #tpu.memory_space<any>>)
    return
  }
}

</mosaic_0001>

<bundles_post_ra>
// kernel: tpu_custom_call.1
= control target key start
LH: loop header
LB: loop body
LE: loop exit
PB: predicated region body
PF: predicated region fallthrough
CT: control target
= control target key end

     0   :  { %s88_s0 = inlined_call_operand.vmem [shape: f32[3,1], index: 0, kind: input, shape index: {}]   ;;  %s89_s1 = inlined_call_operand.vmem [shape: f32[3,1], index: 1, kind: output, shape index: {}]  }
   0x1   :  { %v23_v0 = vld [vmem:[%s88_s0] sm:$0x7] }
   0x2   :  { %24 = vst [vmem:[%s89_s1] sm:$0x7] %v23_v0 }
   0x3   :  { %49 = vsyncadd [#allocation2], 48 }
   0x4   :  { %70 = dma.done.wait [#allocation2], 48 }
   0x5   :  { %71 = vsyncadd [#allocation2], 4294967248 }
   0x6   :  { %53 = vsyncmov [#allocation2] }
   0x9   :  { %s54_s10 = vpop.sfrf %53 }
   0xa   :  { %p69_p0 = scmp.ne.s32.totalorder %s54_s10, 0 }
   0xc   :  { %58 = shalt.err (%p69_p0)  }

</bundles_post_ra>
